<compile_context>
chip_gen: v7x
topology: tpu7x:2x2x1
jax: 0.10.0
libtpu: 0.0.40
codegen_flags: <defaults>
</compile_context>

<pallas_src>
import functools

import jax
import jax.numpy as jnp
import numpy as np
from jax.experimental import pallas as pl
from jax.experimental.pallas import tpu as pltpu


def _triuvec_indices(c):
    """Row-major flattened indices of the upper triangle (incl. diagonal)."""
    return jnp.asarray(
        np.flatnonzero(np.triu(np.ones((c, c), dtype=np.float32)).reshape(-1)),
        dtype=jnp.int32)


def _default_vmem_budget():
    """Generation-aware scoped-VMEM budget (also wired into vmem_limit_bytes)."""
    try:
        cap = int(pltpu.get_tpu_info().vmem_capacity_bytes)
    except Exception:
        cap = 64 * 1024 * 1024  # conservative fallback: v7x physical per TC
    # ~75% of physical: v7x (64 MiB) -> 48 MiB; v5e/v6e (128 MiB) -> 96 MiB,
    # leaving headroom for Mosaic-internal scratch and the pipeline buffers.
    return int(min(cap * 3 // 4, 96 * 1024 * 1024))


def _bmm(a, b, operand_dtype):
    """Batched (b,i,k) @ (b,k,j) -> (b,i,j); operands cast, f32 accumulation."""
    return jax.lax.dot_general(
        a.astype(operand_dtype), b.astype(operand_dtype),
        dimension_numbers=(((2,), (1,)), ((0,), (0,))),
        preferred_element_type=jnp.float32)


def _mpncov_kernel(x_ref, o_ref, *, iter_n: int, ns_dtype):
    """Covariance pooling + Newton-Schulz matrix sqrt for a (Bt, C, M) block.

    x_ref: (Bt, C, M) VMEM tile  (C channels, M = H*W spatial positions)
    o_ref: (Bt, C, C) VMEM tile  (matrix sqrt of the covariance)
    """
    x = x_ref[...].astype(jnp.float32)                  # (Bt, C, M)
    _, c, m = x.shape

    # ---- Covpool (folded) ----------------------------------------------------
    # x @ I_hat == (x - row_mean(x)) / M; the 1/M factor is folded into the
    # trace normalization below, so only the raw centered contraction hits the
    # MXU and there is no dense (M, M) I_hat.
    mean = jnp.mean(x, axis=2, keepdims=True)           # (Bt, C, 1)
    xc = x - mean

    # M * trace(cov), computed straight from the activations: a cheap (Bt,C,M)
    # VPU/XLU pass that hides under the MXU contraction (no (Bt,C,C) masked
    # reduce and no eye on the trace path).
    tr_raw = jnp.sum(xc * x, axis=(1, 2), keepdims=True)  # (Bt, 1, 1)

    # raw[b,i,j] = sum_m xc[b,i,m] * x[b,j,m]  ( == M * cov ), f32 on the MXU.
    raw = jax.lax.dot_general(
        xc, x, dimension_numbers=(((2,), (2,)), ((0,), (0,))),
        preferred_element_type=jnp.float32)              # (Bt, C, C)

    # A = cov / trace(cov); the 1/M cancels -> one scaling pass, exact divide.
    # TODO(synk): like PyTorch, there is no epsilon guard for trace(cov) == 0.
    a = raw * (1.0 / tr_raw)

    # ---- Sqrtm: identity-free Newton-Schulz (f32 state, ns_dtype operands) ---
    #   0.5 * (3I - P) @ X  ==  1.5 * X - 0.5 * (P @ X)
    bmm = lambda p, q: _bmm(p, q, ns_dtype)
    if iter_n < 2:
        yzy = 1.5 * a - 0.5 * bmm(a, a)
    else:
        # Identity is only needed to seed Z0 = 0.5 * (3I - A).
        eye = (jax.lax.broadcasted_iota(jnp.int32, (1, c, c), 1) ==
               jax.lax.broadcasted_iota(jnp.int32, (1, c, c), 2)
               ).astype(jnp.float32)
        y = 1.5 * a - 0.5 * bmm(a, a)        # A @ (0.5 * (3I - A))
        z = 1.5 * eye - 0.5 * a              # 0.5 * (3I - A)
        for _ in range(1, iter_n - 1):
            p = bmm(z, y)
            y_new = 1.5 * y - 0.5 * bmm(y, p)
            z = 1.5 * z - 0.5 * bmm(p, z)
            y = y_new
        yzy = 1.5 * y - 0.5 * bmm(y, bmm(z, y))

    # y_out = YZY * sqrt(normA), with normA = trace(cov) = tr_raw / M.
    o_ref[...] = (yzy * jnp.sqrt(tr_raw * (1.0 / m))).astype(o_ref.dtype)


def _choose_block_batch(b, c, m, vmem_budget_bytes):
    """Pick (batch elements per grid step, number of grid steps).

    Conservative f32 working-set estimate per in-flight batch element:
      input tile (double-buffered) + loaded/centered copies : ~16 * C * M
      NS temporaries (A, Y, Z, P, Y', YZY), bf16 matmul
      operand casts, single-buffered output block           : ~40 * C * C
    plus a block-shared term for the identity / iota transients.
    """
    per_elem = 16 * c * m + 40 * c * c
    fixed = 12 * c * c
    avail = max(vmem_budget_bytes - fixed, per_elem)
    bt = max(1, min(avail // per_elem, b))
    steps = pl.cdiv(b, bt)
    # >= 2 grid steps so the 'parallel' batch axis can shard across TensorCores,
    # and an even step count so v7x's two cores get the same amount of work.
    if steps < 2 and b >= 2:
        steps = 2
    if steps >= 2 and steps % 2 == 1:
        steps += 1
    bt = int(pl.cdiv(b, steps))
    return bt, int(steps)


def mpncov_forward(x, *, iter_num=3, is_sqrt=True, is_vec=True,
                   vmem_budget_bytes=None, ns_matmul_dtype=jnp.bfloat16):
    """MPNCOV forward.  x: (B, C, H, W) float32 (NCHW, like PyTorch).

    ns_matmul_dtype: operand dtype for the Newton-Schulz C^3 matmuls
      (accumulation is always f32).  Pass jnp.float32 for bit-closer parity
      with the PyTorch reference at ~2-4x the MXU cost.
    """
    assert is_sqrt, "only the default is_sqrt=True path is implemented"
    b, c, h, w = x.shape
    m = h * w
    # Note: a lane-dense (B, M, C) layout (C multiple of 128 in production) was
    # considered; the covariance stage is secondary at the module's default
    # C=2048, so the known-good (B, C, M) contraction layout is kept.
    x_flat = x.reshape(b, c, m)

    if vmem_budget_bytes is None:
        vmem_budget_bytes = _default_vmem_budget()

    bt, steps = _choose_block_batch(b, c, m, vmem_budget_bytes)
    b_pad = bt * steps
    if b_pad != b:
        # Ragged batch: pad with zeros.  Padded rows compute garbage (NaNs from
        # the 0/0 trace) that is sliced away below and never observed.
        x_flat = jnp.pad(x_flat, ((0, b_pad - b), (0, 0), (0, 0)))

    kernel = functools.partial(_mpncov_kernel, iter_n=iter_num,
                               ns_dtype=ns_matmul_dtype)

    # Advisory cost estimate: covariance contraction + Newton-Schulz matmuls.
    n_mm = 1 if iter_num < 2 else 3 * (iter_num - 2) + 3
    cost = pl.CostEstimate(
        flops=2 * b_pad * c * c * m + 2 * b_pad * n_mm * c ** 3,
        transcendentals=2 * b_pad,
        bytes_accessed=4 * b_pad * (c * m + c * c))

    def call(single_buffer_out):
        out_idx = lambda i: (i, 0, 0)
        if single_buffer_out:
            # MXU-bound kernel: double-buffering the (Bt,C,C) output only costs
            # VMEM (Bt*C*C*4 bytes), so single-buffer it.
            out_spec = pl.BlockSpec((bt, c, c), out_idx,
                                    pipeline_mode=pl.Buffered(1))
        else:
            out_spec = pl.BlockSpec((bt, c, c), out_idx)
        return pl.pallas_call(
            kernel,
            out_shape=jax.ShapeDtypeStruct((b_pad, c, c), x.dtype),
            grid_spec=pltpu.PrefetchScalarGridSpec(
                num_scalar_prefetch=0,
                grid=(steps,),
                in_specs=[pl.BlockSpec((bt, c, m), lambda i: (i, 0, 0))],
                out_specs=out_spec),
            compiler_params=pltpu.CompilerParams(
                dimension_semantics=("parallel",),
                vmem_limit_bytes=int(vmem_budget_bytes)),
            cost_estimate=cost,
        )(x_flat)

    try:
        cov_sqrt = call(single_buffer_out=True)
    except Exception:
        # pipeline_mode=pl.Buffered(1) not supported by this Pallas/Mosaic
        # version: fall back to the default (double-buffered) output.
        cov_sqrt = call(single_buffer_out=False)

    if b_pad != b:
        cov_sqrt = cov_sqrt[:b]

    if not is_vec:
        return cov_sqrt

    # ---- Triuvec (glue): static-index gather of the upper triangle ----------
    # Matches PyTorch's x[:, index] with index of shape (D, 1) -> (B, D, 1).
    idx = _triuvec_indices(c)
    return jnp.take(cov_sqrt.reshape(b, c * c), idx, axis=1)[..., None]


def _mpncov_reference(x, iter_num=3):
    """Pure-JAX mirror of the PyTorch forward math (f32, high precision)."""
    hi = jax.lax.Precision.HIGHEST
    b, c, h, w = x.shape
    m = h * w
    xm = x.reshape(b, c, m).astype(jnp.float32)
    i_hat = ((-1.0 / (m * m)) * jnp.ones((m, m), jnp.float32)
             + (1.0 / m) * jnp.eye(m, dtype=jnp.float32))
    xh = jnp.einsum("bcm,mn->bcn", xm, i_hat, precision=hi)
    cov = jnp.einsum("bcm,bdm->bcd", xh, xm, precision=hi)
    eye = jnp.eye(c, dtype=jnp.float32)
    i3 = 3.0 * eye
    norm_a = jnp.trace(cov, axis1=1, axis2=2)
    a = cov / norm_a[:, None, None]
    mm = lambda p, q: jnp.matmul(p, q, precision=hi)
    if iter_num < 2:
        yzy = mm(a, 0.5 * (i3 - a))
    else:
        zy = 0.5 * (i3 - a)
        y = mm(a, zy)
        z = zy
        for _ in range(1, iter_num - 1):
            zy = 0.5 * (i3 - mm(z, y))
            y, z = mm(y, zy), mm(zy, z)
        yzy = 0.5 * mm(y, i3 - mm(z, y))
    return yzy * jnp.sqrt(norm_a)[:, None, None]


if __name__ == "__main__":
    # Small deterministic example consistent with the module's forward:
    # batch=2, channels=32, spatial 8x8 (dimension_reduction=None -> no params).
    key = jax.random.PRNGKey(0)
    B, C, H, W = 2, 32, 8, 8
    x = jax.random.normal(key, (B, C, H, W), dtype=jnp.float32)

    out = mpncov_forward(x, iter_num=3, is_sqrt=True, is_vec=True)
    out = jax.block_until_ready(out)

    expected_dim = C * (C + 1) // 2
    assert out.shape == (B, expected_dim, 1), out.shape
    assert bool(jnp.all(jnp.isfinite(out)))

    # Loose aggregate accuracy check vs a pure-JAX mirror of the PyTorch math
    # (the kernel runs the Newton-Schulz matmuls with bf16 operands).
    ref_mat = _mpncov_reference(x, iter_num=3)
    idx = _triuvec_indices(C)
    ref = jnp.take(ref_mat.reshape(B, C * C), idx, axis=1)[..., None]
    rel_err = float(jnp.linalg.norm(out - ref) / jnp.linalg.norm(ref))
    assert rel_err < 3e-2, rel_err

    print("KERNEL_OK")
</pallas_src>

<mosaic_0001>
module attributes {stable_mosaic.version = 11 : i64} {
  func.func @_mpncov_kernel(%arg0: i32, %arg1: memref<1x32x64xf32, #tpu.memory_space<vmem>>, %arg2: memref<1x32x32xf32, #tpu.memory_space<vmem>>) attributes {dimension_semantics = [#tpu.dimension_semantics<parallel>], iteration_bounds = array<i64: 2>, scalar_prefetch = 0 : i64, scratch_operands = 0 : i64, tpu.core_type = #tpu.core_type<tc>, window_params = [{transform_indices = @transform_0, window_bounds = array<i64: 1, 32, 64>}, {pipeline_mode = #tpu.pipeline_mode<synchronous>, transform_indices = @transform_1, window_bounds = array<i64: 1, 32, 32>}]} {
    %c0 = arith.constant 0 : index
    %c0_0 = arith.constant 0 : index
    %c0_1 = arith.constant 0 : index
    %0 = vector.load %arg1[%c0, %c0_0, %c0_1] : memref<1x32x64xf32, #tpu.memory_space<vmem>>, vector<1x32x64xf32>
    %cst = arith.constant dense<0.000000e+00> : vector<1x32xf32>
    %1 = vector.multi_reduction <add>, %0, %cst [2] : vector<1x32x64xf32> to vector<1x32xf32>
    %2 = vector.shape_cast %1 : vector<1x32xf32> to vector<1x32x1xf32>
    %cst_2 = arith.constant 6.400000e+01 : f32
    %3 = vector.broadcast %cst_2 : f32 to vector<1x32x1xf32>
    %4 = arith.divf %2, %3 : vector<1x32x1xf32>
    %5 = vector.broadcast %4 : vector<1x32x1xf32> to vector<1x32x64xf32>
    %6 = arith.subf %0, %5 : vector<1x32x64xf32>
    %7 = arith.mulf %6, %0 : vector<1x32x64xf32>
    %cst_3 = arith.constant dense<0.000000e+00> : vector<1xf32>
    %8 = vector.multi_reduction <add>, %7, %cst_3 [1, 2] : vector<1x32x64xf32> to vector<1xf32>
    %9 = vector.shape_cast %8 : vector<1xf32> to vector<1x1x1xf32>
    %cst_4 = arith.constant dense<0.000000e+00> : vector<1x32x32xf32>
    %10 = tpu.matmul %6, %0, %cst_4 {dimension_numbers = #tpu.dot_dimension_numbers<[2], [2], [1], [1], [0, 0, 0, 1, 1, 1], [0], [0]>} : vector<1x32x64xf32>, vector<1x32x64xf32>, vector<1x32x32xf32> -> vector<1x32x32xf32>
    %cst_5 = arith.constant 1.000000e+00 : f32
    %11 = vector.broadcast %cst_5 : f32 to vector<1x1x1xf32>
    %12 = arith.divf %11, %9 : vector<1x1x1xf32>
    %13 = vector.broadcast %12 : vector<1x1x1xf32> to vector<1x32x32xf32>
    %14 = arith.mulf %10, %13 : vector<1x32x32xf32>
    %15 = tpu.iota {dimensions = array<i32: 1>} : vector<1x32x32xi32>
    %16 = tpu.iota {dimensions = array<i32: 2>} : vector<1x32x32xi32>
    %17 = arith.cmpi eq, %15, %16 : vector<1x32x32xi32>
    %18 = arith.extui %17 : vector<1x32x32xi1> to vector<1x32x32xi32>
    %19 = arith.sitofp %18 : vector<1x32x32xi32> to vector<1x32x32xf32>
    %cst_6 = arith.constant 1.500000e+00 : f32
    %20 = vector.broadcast %cst_6 : f32 to vector<1x32x32xf32>
    %21 = arith.mulf %20, %14 : vector<1x32x32xf32>
    %22 = arith.truncf %14 : vector<1x32x32xf32> to vector<1x32x32xbf16>
    %23 = arith.truncf %14 : vector<1x32x32xf32> to vector<1x32x32xbf16>
    %cst_7 = arith.constant dense<0.000000e+00> : vector<1x32x32xf32>
    %24 = tpu.matmul %22, %23, %cst_7 {dimension_numbers = #tpu.dot_dimension_numbers<[2], [1], [1], [2], [0, 0, 0, 1, 1, 2], [0], [0]>} : vector<1x32x32xbf16>, vector<1x32x32xbf16>, vector<1x32x32xf32> -> vector<1x32x32xf32>
    %cst_8 = arith.constant 5.000000e-01 : f32
    %25 = vector.broadcast %cst_8 : f32 to vector<1x32x32xf32>
    %26 = arith.mulf %25, %24 : vector<1x32x32xf32>
    %27 = arith.subf %21, %26 : vector<1x32x32xf32>
    %cst_9 = arith.constant 1.500000e+00 : f32
    %28 = vector.broadcast %cst_9 : f32 to vector<1x32x32xf32>
    %29 = arith.mulf %28, %19 : vector<1x32x32xf32>
    %cst_10 = arith.constant 5.000000e-01 : f32
    %30 = vector.broadcast %cst_10 : f32 to vector<1x32x32xf32>
    %31 = arith.mulf %30, %14 : vector<1x32x32xf32>
    %32 = arith.subf %29, %31 : vector<1x32x32xf32>
    %33 = arith.truncf %32 : vector<1x32x32xf32> to vector<1x32x32xbf16>
    %34 = arith.truncf %27 : vector<1x32x32xf32> to vector<1x32x32xbf16>
    %cst_11 = arith.constant dense<0.000000e+00> : vector<1x32x32xf32>
    %35 = tpu.matmul %33, %34, %cst_11 {dimension_numbers = #tpu.dot_dimension_numbers<[2], [1], [1], [2], [0, 0, 0, 1, 1, 2], [0], [0]>} : vector<1x32x32xbf16>, vector<1x32x32xbf16>, vector<1x32x32xf32> -> vector<1x32x32xf32>
    %cst_12 = arith.constant 1.500000e+00 : f32
    %36 = vector.broadcast %cst_12 : f32 to vector<1x32x32xf32>
    %37 = arith.mulf %36, %27 : vector<1x32x32xf32>
    %38 = arith.truncf %27 : vector<1x32x32xf32> to vector<1x32x32xbf16>
    %39 = arith.truncf %35 : vector<1x32x32xf32> to vector<1x32x32xbf16>
    %cst_13 = arith.constant dense<0.000000e+00> : vector<1x32x32xf32>
    %40 = tpu.matmul %38, %39, %cst_13 {dimension_numbers = #tpu.dot_dimension_numbers<[2], [1], [1], [2], [0, 0, 0, 1, 1, 2], [0], [0]>} : vector<1x32x32xbf16>, vector<1x32x32xbf16>, vector<1x32x32xf32> -> vector<1x32x32xf32>
    %cst_14 = arith.constant 5.000000e-01 : f32
    %41 = vector.broadcast %cst_14 : f32 to vector<1x32x32xf32>
    %42 = arith.mulf %41, %40 : vector<1x32x32xf32>
    %43 = arith.subf %37, %42 : vector<1x32x32xf32>
    %cst_15 = arith.constant 1.500000e+00 : f32
    %44 = vector.broadcast %cst_15 : f32 to vector<1x32x32xf32>
    %45 = arith.mulf %44, %32 : vector<1x32x32xf32>
    %46 = arith.truncf %35 : vector<1x32x32xf32> to vector<1x32x32xbf16>
    %47 = arith.truncf %32 : vector<1x32x32xf32> to vector<1x32x32xbf16>
    %cst_16 = arith.constant dense<0.000000e+00> : vector<1x32x32xf32>
    %48 = tpu.matmul %46, %47, %cst_16 {dimension_numbers = #tpu.dot_dimension_numbers<[2], [1], [1], [2], [0, 0, 0, 1, 1, 2], [0], [0]>} : vector<1x32x32xbf16>, vector<1x32x32xbf16>, vector<1x32x32xf32> -> vector<1x32x32xf32>
    %cst_17 = arith.constant 5.000000e-01 : f32
    %49 = vector.broadcast %cst_17 : f32 to vector<1x32x32xf32>
    %50 = arith.mulf %49, %48 : vector<1x32x32xf32>
    %51 = arith.subf %45, %50 : vector<1x32x32xf32>
    %cst_18 = arith.constant 1.500000e+00 : f32
    %52 = vector.broadcast %cst_18 : f32 to vector<1x32x32xf32>
    %53 = arith.mulf %52, %43 : vector<1x32x32xf32>
    %54 = arith.truncf %51 : vector<1x32x32xf32> to vector<1x32x32xbf16>
    %55 = arith.truncf %43 : vector<1x32x32xf32> to vector<1x32x32xbf16>
    %cst_19 = arith.constant dense<0.000000e+00> : vector<1x32x32xf32>
    %56 = tpu.matmul %54, %55, %cst_19 {dimension_numbers = #tpu.dot_dimension_numbers<[2], [1], [1], [2], [0, 0, 0, 1, 1, 2], [0], [0]>} : vector<1x32x32xbf16>, vector<1x32x32xbf16>, vector<1x32x32xf32> -> vector<1x32x32xf32>
    %57 = arith.truncf %43 : vector<1x32x32xf32> to vector<1x32x32xbf16>
    %58 = arith.truncf %56 : vector<1x32x32xf32> to vector<1x32x32xbf16>
    %cst_20 = arith.constant dense<0.000000e+00> : vector<1x32x32xf32>
    %59 = tpu.matmul %57, %58, %cst_20 {dimension_numbers = #tpu.dot_dimension_numbers<[2], [1], [1], [2], [0, 0, 0, 1, 1, 2], [0], [0]>} : vector<1x32x32xbf16>, vector<1x32x32xbf16>, vector<1x32x32xf32> -> vector<1x32x32xf32>
    %cst_21 = arith.constant 5.000000e-01 : f32
    %60 = vector.broadcast %cst_21 : f32 to vector<1x32x32xf32>
    %61 = arith.mulf %60, %59 : vector<1x32x32xf32>
    %62 = arith.subf %53, %61 : vector<1x32x32xf32>
    %cst_22 = arith.constant 1.562500e-02 : f32
    %63 = vector.broadcast %cst_22 : f32 to vector<1x1x1xf32>
    %64 = arith.mulf %9, %63 : vector<1x1x1xf32>
    %65 = math.sqrt %64 : vector<1x1x1xf32>
    %66 = vector.broadcast %65 : vector<1x1x1xf32> to vector<1x32x32xf32>
    %67 = arith.mulf %62, %66 : vector<1x32x32xf32>
    %c0_23 = arith.constant 0 : index
    %c0_24 = arith.constant 0 : index
    %c0_25 = arith.constant 0 : index
    %68 = vector.load %arg2[%c0_23, %c0_24, %c0_25] : memref<1x32x32xf32, #tpu.memory_space<vmem>>, vector<1x32x32xf32>
    tpu.vector_store %arg2[%c0_23, %c0_24, %c0_25], %67 {strides = array<i32>} : memref<1x32x32xf32, #tpu.memory_space<vmem>>, vector<1x32x32xf32>,
    return
  }
  func.func @transform_0(%arg0: i32) -> (i32, i32, i32) {
    %c0_i32 = arith.constant 0 : i32
    %c0_i32_0 = arith.constant 0 : i32
    %c0_i32_1 = arith.constant 0 : i32
    return %arg0, %c0_i32, %c0_i32_0 : i32, i32, i32
  }
  func.func @transform_1(%arg0: i32) -> (i32, i32, i32) {
    %c0_i32 = arith.constant 0 : i32
    %c0_i32_0 = arith.constant 0 : i32
    %c0_i32_1 = arith.constant 0 : i32
    return %arg0, %c0_i32, %c0_i32_0 : i32, i32, i32
  }
}

module attributes {stable_mosaic.version = 11 : i64} {
  func.func @_mpncov_kernel(%arg0: i32, %arg1: memref<1x32x64xf32, #tpu.memory_space<vmem>>, %arg2: memref<1x32x32xf32, #tpu.memory_space<vmem>>) attributes {dimension_semantics = [#tpu.dimension_semantics<parallel>], iteration_bounds = array<i64: 2>, scalar_prefetch = 0 : i64, scratch_operands = 0 : i64, tpu.core_type = #tpu.core_type<tc>, window_params = [{transform_indices = @transform_0, window_bounds = array<i64: 1, 32, 64>}, {transform_indices = @transform_1, window_bounds = array<i64: 1, 32, 32>}]} {
    %c0 = arith.constant 0 : index
    %c0_0 = arith.constant 0 : index
    %c0_1 = arith.constant 0 : index
    %0 = vector.load %arg1[%c0, %c0_0, %c0_1] : memref<1x32x64xf32, #tpu.memory_space<vmem>>, vector<1x32x64xf32>
    %cst = arith.constant dense<0.000000e+00> : vector<1x32xf32>
    %1 = vector.multi_reduction <add>, %0, %cst [2] : vector<1x32x64xf32> to vector<1x32xf32>
    %2 = vector.shape_cast %1 : vector<1x32xf32> to vector<1x32x1xf32>
    %cst_2 = arith.constant 6.400000e+01 : f32
    %3 = vector.broadcast %cst_2 : f32 to vector<1x32x1xf32>
    %4 = arith.divf %2, %3 : vector<1x32x1xf32>
    %5 = vector.broadcast %4 : vector<1x32x1xf32> to vector<1x32x64xf32>
    %6 = arith.subf %0, %5 : vector<1x32x64xf32>
    %7 = arith.mulf %6, %0 : vector<1x32x64xf32>
    %cst_3 = arith.constant dense<0.000000e+00> : vector<1xf32>
    %8 = vector.multi_reduction <add>, %7, %cst_3 [1, 2] : vector<1x32x64xf32> to vector<1xf32>
    %9 = vector.shape_cast %8 : vector<1xf32> to vector<1x1x1xf32>
    %cst_4 = arith.constant dense<0.000000e+00> : vector<1x32x32xf32>
    %10 = tpu.matmul %6, %0, %cst_4 {dimension_numbers = #tpu.dot_dimension_numbers<[2], [2], [1], [1], [0, 0, 0, 1, 1, 1], [0], [0]>} : vector<1x32x64xf32>, vector<1x32x64xf32>, vector<1x32x32xf32> -> vector<1x32x32xf32>
    %cst_5 = arith.constant 1.000000e+00 : f32
    %11 = vector.broadcast %cst_5 : f32 to vector<1x1x1xf32>
    %12 = arith.divf %11, %9 : vector<1x1x1xf32>
    %13 = vector.broadcast %12 : vector<1x1x1xf32> to vector<1x32x32xf32>
    %14 = arith.mulf %10, %13 : vector<1x32x32xf32>
    %15 = tpu.iota {dimensions = array<i32: 1>} : vector<1x32x32xi32>
    %16 = tpu.iota {dimensions = array<i32: 2>} : vector<1x32x32xi32>
    %17 = arith.cmpi eq, %15, %16 : vector<1x32x32xi32>
    %18 = arith.extui %17 : vector<1x32x32xi1> to vector<1x32x32xi32>
    %19 = arith.sitofp %18 : vector<1x32x32xi32> to vector<1x32x32xf32>
    %cst_6 = arith.constant 1.500000e+00 : f32
    %20 = vector.broadcast %cst_6 : f32 to vector<1x32x32xf32>
    %21 = arith.mulf %20, %14 : vector<1x32x32xf32>
    %22 = arith.truncf %14 : vector<1x32x32xf32> to vector<1x32x32xbf16>
    %23 = arith.truncf %14 : vector<1x32x32xf32> to vector<1x32x32xbf16>
    %cst_7 = arith.constant dense<0.000000e+00> : vector<1x32x32xf32>
    %24 = tpu.matmul %22, %23, %cst_7 {dimension_numbers = #tpu.dot_dimension_numbers<[2], [1], [1], [2], [0, 0, 0, 1, 1, 2], [0], [0]>} : vector<1x32x32xbf16>, vector<1x32x32xbf16>, vector<1x32x32xf32> -> vector<1x32x32xf32>
    %cst_8 = arith.constant 5.000000e-01 : f32
    %25 = vector.broadcast %cst_8 : f32 to vector<1x32x32xf32>
    %26 = arith.mulf %25, %24 : vector<1x32x32xf32>
    %27 = arith.subf %21, %26 : vector<1x32x32xf32>
    %cst_9 = arith.constant 1.500000e+00 : f32
    %28 = vector.broadcast %cst_9 : f32 to vector<1x32x32xf32>
    %29 = arith.mulf %28, %19 : vector<1x32x32xf32>
    %cst_10 = arith.constant 5.000000e-01 : f32
    %30 = vector.broadcast %cst_10 : f32 to vector<1x32x32xf32>
    %31 = arith.mulf %30, %14 : vector<1x32x32xf32>
    %32 = arith.subf %29, %31 : vector<1x32x32xf32>
    %33 = arith.truncf %32 : vector<1x32x32xf32> to vector<1x32x32xbf16>
    %34 = arith.truncf %27 : vector<1x32x32xf32> to vector<1x32x32xbf16>
    %cst_11 = arith.constant dense<0.000000e+00> : vector<1x32x32xf32>
    %35 = tpu.matmul %33, %34, %cst_11 {dimension_numbers = #tpu.dot_dimension_numbers<[2], [1], [1], [2], [0, 0, 0, 1, 1, 2], [0], [0]>} : vector<1x32x32xbf16>, vector<1x32x32xbf16>, vector<1x32x32xf32> -> vector<1x32x32xf32>
    %cst_12 = arith.constant 1.500000e+00 : f32
    %36 = vector.broadcast %cst_12 : f32 to vector<1x32x32xf32>
    %37 = arith.mulf %36, %27 : vector<1x32x32xf32>
    %38 = arith.truncf %27 : vector<1x32x32xf32> to vector<1x32x32xbf16>
    %39 = arith.truncf %35 : vector<1x32x32xf32> to vector<1x32x32xbf16>
    %cst_13 = arith.constant dense<0.000000e+00> : vector<1x32x32xf32>
    %40 = tpu.matmul %38, %39, %cst_13 {dimension_numbers = #tpu.dot_dimension_numbers<[2], [1], [1], [2], [0, 0, 0, 1, 1, 2], [0], [0]>} : vector<1x32x32xbf16>, vector<1x32x32xbf16>, vector<1x32x32xf32> -> vector<1x32x32xf32>
    %cst_14 = arith.constant 5.000000e-01 : f32
    %41 = vector.broadcast %cst_14 : f32 to vector<1x32x32xf32>
    %42 = arith.mulf %41, %40 : vector<1x32x32xf32>
    %43 = arith.subf %37, %42 : vector<1x32x32xf32>
    %cst_15 = arith.constant 1.500000e+00 : f32
    %44 = vector.broadcast %cst_15 : f32 to vector<1x32x32xf32>
    %45 = arith.mulf %44, %32 : vector<1x32x32xf32>
    %46 = arith.truncf %35 : vector<1x32x32xf32> to vector<1x32x32xbf16>
    %47 = arith.truncf %32 : vector<1x32x32xf32> to vector<1x32x32xbf16>
    %cst_16 = arith.constant dense<0.000000e+00> : vector<1x32x32xf32>
    %48 = tpu.matmul %46, %47, %cst_16 {dimension_numbers = #tpu.dot_dimension_numbers<[2], [1], [1], [2], [0, 0, 0, 1, 1, 2], [0], [0]>} : vector<1x32x32xbf16>, vector<1x32x32xbf16>, vector<1x32x32xf32> -> vector<1x32x32xf32>
    %cst_17 = arith.constant 5.000000e-01 : f32
    %49 = vector.broadcast %cst_17 : f32 to vector<1x32x32xf32>
    %50 = arith.mulf %49, %48 : vector<1x32x32xf32>
    %51 = arith.subf %45, %50 : vector<1x32x32xf32>
    %cst_18 = arith.constant 1.500000e+00 : f32
    %52 = vector.broadcast %cst_18 : f32 to vector<1x32x32xf32>
    %53 = arith.mulf %52, %43 : vector<1x32x32xf32>
    %54 = arith.truncf %51 : vector<1x32x32xf32> to vector<1x32x32xbf16>
    %55 = arith.truncf %43 : vector<1x32x32xf32> to vector<1x32x32xbf16>
    %cst_19 = arith.constant dense<0.000000e+00> : vector<1x32x32xf32>
    %56 = tpu.matmul %54, %55, %cst_19 {dimension_numbers = #tpu.dot_dimension_numbers<[2], [1], [1], [2], [0, 0, 0, 1, 1, 2], [0], [0]>} : vector<1x32x32xbf16>, vector<1x32x32xbf16>, vector<1x32x32xf32> -> vector<1x32x32xf32>
    %57 = arith.truncf %43 : vector<1x32x32xf32> to vector<1x32x32xbf16>
    %58 = arith.truncf %56 : vector<1x32x32xf32> to vector<1x32x32xbf16>
    %cst_20 = arith.constant dense<0.000000e+00> : vector<1x32x32xf32>
    %59 = tpu.matmul %57, %58, %cst_20 {dimension_numbers = #tpu.dot_dimension_numbers<[2], [1], [1], [2], [0, 0, 0, 1, 1, 2], [0], [0]>} : vector<1x32x32xbf16>, vector<1x32x32xbf16>, vector<1x32x32xf32> -> vector<1x32x32xf32>
    %cst_21 = arith.constant 5.000000e-01 : f32
    %60 = vector.broadcast %cst_21 : f32 to vector<1x32x32xf32>
    %61 = arith.mulf %60, %59 : vector<1x32x32xf32>
    %62 = arith.subf %53, %61 : vector<1x32x32xf32>
    %cst_22 = arith.constant 1.562500e-02 : f32
    %63 = vector.broadcast %cst_22 : f32 to vector<1x1x1xf32>
    %64 = arith.mulf %9, %63 : vector<1x1x1xf32>
    %65 = math.sqrt %64 : vector<1x1x1xf32>
    %66 = vector.broadcast %65 : vector<1x1x1xf32> to vector<1x32x32xf32>
    %67 = arith.mulf %62, %66 : vector<1x32x32xf32>
    %c0_23 = arith.constant 0 : index
    %c0_24 = arith.constant 0 : index
    %c0_25 = arith.constant 0 : index
    %68 = vector.load %arg2[%c0_23, %c0_24, %c0_25] : memref<1x32x32xf32, #tpu.memory_space<vmem>>, vector<1x32x32xf32>
    tpu.vector_store %arg2[%c0_23, %c0_24, %c0_25], %67 {strides = array<i32>} : memref<1x32x32xf32, #tpu.memory_space<vmem>>, vector<1x32x32xf32>,
    return
  }
  func.func @transform_0(%arg0: i32) -> (i32, i32, i32) {
    %c0_i32 = arith.constant 0 : i32
    %c0_i32_0 = arith.constant 0 : i32
    %c0_i32_1 = arith.constant 0 : i32
    return %arg0, %c0_i32, %c0_i32_0 : i32, i32, i32
  }
  func.func @transform_1(%arg0: i32) -> (i32, i32, i32) {
    %c0_i32 = arith.constant 0 : i32
    %c0_i32_0 = arith.constant 0 : i32
    %c0_i32_1 = arith.constant 0 : i32
    return %arg0, %c0_i32, %c0_i32_0 : i32, i32, i32
  }
}

</mosaic_0001>

<bundles_post_ra>
// kernel: tpu_custom_call.1
= control target key start
LH: loop header
LB: loop body
LE: loop exit
PB: predicated region body
PF: predicated region fallthrough
CT: control target
= control target key end

     0   :  { %6 = vsyncpa [#allocation3], 0  ;;  %s1301_s0 = inlined_call_operand.hbm [shape: f32[2,32,64], index: 0, kind: input, shape index: {}]   ;;  %s1302_s1 = inlined_call_operand.hbm [shape: f32[2,32,32], index: 1, kind: output, shape index: {}]  }
   0x1   :  { %8 = vsyncpa [#allocation3 + $0x1], 0 }
   0x2   :  { %9 = vsyncpa [#allocation4], 0  ;;  %s1103_s6 = smov 0   ;;  %s1105_s7 = smov 0  }
   0x3   :  { %s1107_s8 = smov 0   ;;  %s1109_s9 = smov 0  }
   0x4 LB: > { %s1122_s10 = sadd.s32 4294967295, %s1084_s9   ;;  %s1125_s11 = sadd.s32 1, %s1084_s9   ;;  %s1084_s9 = sphi %s1109_s9, %s1315_s9   ;;  %s1080_s8 = sphi %s1107_s8, %s1314_s8   ;;  %s1076_s7 = sphi %s1105_s7, %s1313_s7   ;;  %s1072_s6 = sphi %s1103_s6, %s1312_s6  }
   0x5   : > { %s19_s12 = ssub.s32 %s1084_s9, %s1125_s11  ;;  %s22_s13 = sadd.s32 1, %s1080_s8 }
   0x6   : > { %p20_p0 = scmp.eq.s32.totalorder %s19_s12, 0  ;;  %p29_p1 = scmp.ne.s32.totalorder %s1080_s8, %s1076_s7 }
   0x7   : > { %p30_p2 = scmp.eq.s32.totalorder %s1084_s9, 0  ;;  %p35_p3 = scmp.ne.s32.totalorder %s1076_s7, %s1072_s6 }
   0x8   : > { %s1135_s14 = scalar_select %p20_p0, %s1080_s8, %s22_s13  }
   0x9   : > { %p1137_p4 = por %p30_p2, %p29_p1  ;;  %p36_p5 = scmp.eq.s32.totalorder %s1122_s10, 0 }
   0xa   : > { %p59_p6 = scmp.eq.s32.totalorder %s1122_s10, 1  ;;  %p945_p8 = scmp.lt.s32.totalorder %s1084_s9, 2 }
   0xb   : > { %p1143_p7 = por %p36_p5, %p35_p3  ;;  %s85_s18 = sand.u32 1, %s1080_s8  }
   0xc   : > { %p1148_p9 = por %p59_p6, %p29_p1  ;;  %s796_s19 = sshll.u32 %s85_s18, 5 }
   0xd   : > { %s829_s20 = sshll.u32 %s1084_s9, 9  ;;  %s89_s24 = scalar_lea.vmem [#allocation2], %s796_s19 }
   0xe   : > { %s1306_s17 = scalar_select %p1148_p9, 1, 0 }
   0xf   : > { %s1157_s23 = scalar_lea.hbm %s1301_s0, %s829_s20  ;;  %s96_s25 = sshll.u32 %s89_s24, 4  ;;  %s1159_s25 = int_to_ptr.vmem [resolvable:$true] %s96_s25 }
  0x10   : > { %p1163_p10 = pnand %p945_p8, %p1137_p4  ;;  %s1168_s27 = scalar_lea.sflag [#allocation3], %s85_s18 }
  0x11   : > { %s988_s28 = scalar_lea.hbm %s1157_s23, 512  ;;  %s993_s2 = scalar_lea.hbm %s1301_s0, 1024 }
  0x12   : > { %p989_p12 = scmp.ne.s32.totalorder %s1157_s23, %s988_s28  ;;  %p990_p13 = pneg %p1163_p10 }
  0x13   : > { %p994_p2 = scmp.lt.u32.totalorder %s1157_s23, %s1301_s0  ;;  %p995_p3 = scmp.lt.u32.totalorder %s993_s2, %s988_s28 }
  0x14   : > { %p991_p0 = pnand %p990_p13, %p989_p12  ;;  %p997_p5 = scmp.lt.u32.totalorder %s988_s28, %s1157_s23 }
  0x15   : > { %p996_p4 = por %p995_p3, %p994_p2 }
  0x16   : > { %p992_p1 = pneg %p991_p0 }
  0x17   : > { %p998_p6 = por %p997_p5, %p996_p4 }
  0x19   : > { %p999_p8 = pnand %p998_p6, %p992_p1 }
  0x1b   : > { %1002 = shalt.err (!%p999_p8)
}
  0x1c   : > { %s1003_s5 = scalar_lea.vmem %s1159_s25, 512  ;;  %s1086_s6 = smov [#allocation2]  }
  0x1d   : > { %p1004_p12 = scmp.ne.s32.totalorder %s1159_s25, %s1003_s5  ;;  %s1008_s12 = sshll.u32 %s1086_s6, 4  ;;  %s1009_s12 = int_to_ptr.vmem [resolvable:$false] %s1008_s12 }
  0x1e   : > { %s1010_s13 = scalar_lea.vmem %s1009_s12, 1024  ;;  %p1011_p9 = scmp.lt.s32.totalorder %s1159_s25, %s1009_s12 }
  0x1f   : > { %p1006_p0 = pnand %p1004_p12, %p990_p13  ;;  %p1012_p2 = scmp.lt.s32.totalorder %s1010_s13, %s1003_s5 }
  0x21   : > { %p1007_p11 = pneg %p1006_p0  ;;  %p1013_p3 = por %p1012_p2, %p1011_p9 }
  0x23   : > { %p1014_p4 = pnand %p1013_p3, %p1007_p11 }
  0x25   : > { %1017 = shalt.err (!%p1014_p4)
}
  0x26   : > { %s1087_s15 = smov 128   ;;  %s1088_s18 = smov 8  }
  0x27   : > { %944 = dma.hbm_to_vmem [thread:$0]  (!%p1163_p10), %s1157_s23, 512, %s1159_s25, %s1168_s27, %s1087_s15, %s1087_s15, %s1088_s18  }
  0x28   : > { %p104_p13 = scmp.lt.s32.totalorder %s1084_s9, 3  ;;  %p1308_p1 = scmp.ge.s32.totalorder %s1084_s9, 1 }
  0x2a   : > { %p105_p5 = pnand %p1308_p1, %p104_p13 }
  0x2b   : > { %s110_s19 = sand.u32 (!%p105_p5), 1, %s1076_s7  }
  0x2c   : > { %108 = sbr.rel (%p105_p5) target bundleno = 1575 (0x627), region = 24  ;;  %s800_s20 = sshll.u32 (!%p105_p5), %s110_s19, 5 }
  0x2d   : > { %s111_s21 = scalar_lea.sflag (!%p105_p5), [#allocation3], %s110_s19  ;;  %s114_s22 = scalar_lea.vmem (!%p105_p5), [#allocation2], %s800_s20 }
  0x33   : > { %1063 = dma.done.wait (%p1143_p7), %s111_s21, 512  }
  0x34   : > { %1065 = vsyncadd (%p1143_p7), %s111_s21, 4294966784  ;;  %vm133_vm0 = vcmask 523264   ;;  %v129_v1 = vld [vmem:[%s114_s22] sm:$0xff]  ;;  %v131_v2 = vld [vmem:[%s114_s22 + $0x10] sm:$0xff]  ;;  %v289_v34 = vlaneseq  ;;  %v1089_v39 = vmov 0.0   ;;  %vm314_vm6 = vcmask 261120  }
  0x35   : > { %vm1206_vm1 = vmpackc.low %vm133_vm0, %vm133_vm0  ;;  %v130_v3 = vld [vmem:[%s114_s22 + $0x8] sm:$0xff]  ;;  %v134_v4 = vsel %vm133_vm0, %v129_v1, 0.0  ;;  %v140_v5 = vsel %vm133_vm0, %v131_v2, 0.0  ;;  %v132_v6 = vld [vmem:[%s114_s22 + $0x18] sm:$0xff]  ;;  %s830_s9 = sshll.u32 %s1122_s10, 9  ;;  %s1090_s16 = smov [#allocation5]  }
  0x36   : > { %v925_v7 = vpack.c.bf16 %v130_v3, %v129_v1  ;;  %135 = vadd.xlane.f32.xlu0 %v134_v4  ;;  %141 = vadd.xlane.f32.xlu1 %v140_v5  ;;  %v137_v8 = vsel %vm133_vm0, %v130_v3, 0.0  ;;  %v143_v9 = vsel %vm133_vm0, %v132_v6, 0.0  ;;  %v931_v10 = vpack.c.bf16 %v132_v6, %v131_v2  ;;  %s738_s23 = sshll.u32 %s1090_s16, 4  ;;  %s1255_s26 = scalar_lea.hbm %s1302_s1, %s830_s9  ;;  %s1257_s23 = int_to_ptr.vmem [resolvable:$true] %s738_s23 }
  0x37   : > { %v290_v35 = vshrl.u32 %v289_v34, 7  ;;  %v295_v36 = vand.u32 127, %v289_v34  ;;  %s1018_s10 = scalar_lea.vmem %s1257_s23, 512  ;;  %p1311_p9 = scmp.ne.s32.totalorder %s1306_s17, 0 }
  0x38   : > { %927 = vmatprep.subr.msk.bf16.mxu0 %vm1206_vm1, %v925_v7  ;;  %p1019_p7 = scmp.ne.s32.totalorder %s1257_s23, %s1018_s10  ;;  %p1025_p6 = scmp.lt.s32.totalorder %s1257_s23, %s1257_s23 }
  0x39   : > { %930 = vmatpush3.bf16.xpose.msk.msra.mxu0 %vm1206_vm1, %v925_v7  ;;  %v293_v37 = vadd.s32 24, %v290_v35  ;;  %v292_v38 = vadd.s32 16, %v290_v35  ;;  %v291_v49 = vadd.s32 8, %v290_v35  ;;  %vm296_vm5 = vcmp.eq.s32.totalorder %v290_v35, %v295_v36  ;;  %p1026_p8 = scmp.lt.s32.totalorder %s1018_s10, %s1018_s10 }
  0x3a   : > { %138 = vadd.xlane.f32.xlu0 %v137_v8  ;;  %144 = vadd.xlane.f32.xlu1 %v143_v9  ;;  %v809_v51 = vsel %vm296_vm5, 1.0, %v1089_v39  ;;  %p1020_p10 = pnand %p1019_p7, %p1311_p9 }
  0x3b   : > { %933 = vmatprep.subr.msk.bf16.mxu0 %vm1206_vm1, %v931_v10  ;;  %vm299_vm2 = vcmp.eq.s32.totalorder %v293_v37, %v295_v36  ;;  %vm298_vm3 = vcmp.eq.s32.totalorder %v292_v38, %v295_v36  ;;  %vm297_vm4 = vcmp.eq.s32.totalorder %v291_v49, %v295_v36  ;;  %v378_v58 = vmul.f32 1.5, %v809_v51  ;;  %p1027_p12 = por %p1026_p8, %p1025_p6 }
  0x3c   : > { %v812_v40 = vsel %vm299_vm2, 1.0, %v1089_v39  ;;  %v811_v41 = vsel %vm298_vm3, 1.0, %v1089_v39  ;;  %v810_v50 = vsel %vm297_vm4, 1.0, %v1089_v39  ;;  %p1021_p11 = pneg %p1020_p10 }
  0x3d   : > { %v379_v55 = vmul.f32 1.5, %v810_v50  ;;  %v380_v5 = vmul.f32 1.5, %v811_v41 }
  0x3e   : > { %p1028_p0 = pnand %p1027_p12, %p1021_p11 }
  0x41   : > { %936 = vmatpush3.bf16.xpose.msk.msra.mxu0 %vm1206_vm1, %v931_v10 }
  0xc3   : > { %v136_v11 = vpop.xlane.xlu0 %135  ;;  %v142_v12 = vpop.xlane.xlu1 %141 }
  0xc4   : > { %v147_v13 = vmul.f32 0.015625, %v136_v11  ;;  %v149_v14 = vmul.f32 0.015625, %v142_v12 }
  0xc6   : > { %v151_v15 = vsub.f32 %v129_v1, %v147_v13  ;;  %v153_v18 = vsub.f32 %v131_v2, %v149_v14 }
  0xc7   : > { %v139_v16 = vpop.xlane.xlu0 %138  ;;  %v145_v17 = vpop.xlane.xlu1 %144 }
  0xc8   : > { %v148_v19 = vmul.f32 0.015625, %v139_v16  ;;  %871 = vmatprep.mubr.msk.f32.mxu0 %vm133_vm0, %v151_v15  ;;  %v150_v20 = vmul.f32 0.015625, %v145_v17  ;;  %v155_v22 = vmul.f32 %v151_v15, %v129_v1  ;;  %v157_v24 = vmul.f32 %v153_v18, %v131_v2 }
  0xc9   : > { %v381_v1 = vmul.f32 1.5, %v812_v40 }
  0xca   : > { %v152_v21 = vsub.f32 %v130_v3, %v148_v19  ;;  %v154_v23 = vsub.f32 %v132_v6, %v150_v20  ;;  %v159_v27 = vsel %vm133_vm0, %v155_v22, 0.0  ;;  %v162_v30 = vsel %vm133_vm0, %v157_v24, 0.0 }
  0xcc   : > { %v156_v25 = vmul.f32 %v152_v21, %v130_v3  ;;  %v158_v26 = vmul.f32 %v154_v23, %v132_v6  ;;  %872 = vmatmul.mubr.msk.f32.vlgmr.msra.gmra.mrb[0].mxu0 %vm133_vm0, %v152_v21 }
  0xcd   : > { %874 = vmatprep.mubr.msk.f32.mxu0 %vm133_vm0, %v153_v18 }
  0xce   : > { %v160_v28 = vsel %vm133_vm0, %v156_v25, 0.0  ;;  %v164_v31 = vsel %vm133_vm0, %v158_v26, 0.0 }
  0xcf   : > { %v161_v29 = vadd.f32 %v160_v28, %v159_v27 }
  0xd0   : > { %875 = vmatmul.mubr.msk.f32.gmra.mrb[2].mxu0 %vm133_vm0, %v154_v23 }
  0xd1   : > { %v163_v32 = vadd.f32 %v162_v30, %v161_v29 }
  0xd3   : > { %v165_v33 = vadd.f32 %v164_v31, %v163_v32 }
  0xd5   : > { %166 = vadd.xlane.f32.xlu0 %v165_v33 }
 0x162   : > { %v167_v42 = vpop.xlane.xlu0 %166 }
 0x163   : > { %v168_v43 = vrot.slane %v167_v42, 4 }
 0x165   : > { %v169_v44 = vadd.f32 %v168_v43, %v167_v42 }
 0x167   : > { %v170_v45 = vrot.slane %v169_v44, 2 }
 0x169   : > { %v171_v46 = vadd.f32 %v170_v45, %v169_v44 }
 0x16b   : > { %v172_v47 = vrot.slane %v171_v46, 1 }
 0x16d   : > { %v1230_v48 = vadd.f32 %v172_v47, %v171_v46 }
 0x16f   : > { %984 = vrcp.f32 %v1230_v48 }
 0x179   : > { %v985_v52 = vpop.eup %984 }
 0x19f   : > { %v873_v53 = vpop.f32.mrb[0].mxu0 }
 0x1a0   : > { %v286_v54 = vmul.f32 %v985_v52, %v873_v53  ;;  %v264_v56 = vpop.f32.mrb[1].mxu0 }
 0x1a1   : > { %v285_v57 = vmul.f32 %v985_v52, %v264_v56 }
 0x1a2   : > { %v383_v59 = vmul.f32 0.5, %v286_v54  ;;  %v309_v25 = vmul.f32 1.5, %v286_v54 }
 0x1a3   : > { %v382_v60 = vmul.f32 0.5, %v285_v57  ;;  %v876_v61 = vpop.f32.mrb[2].mxu0  ;;  %v312_v62 = vpack.c.bf16 %v286_v54, %v285_v57  ;;  %v308_v17 = vmul.f32 1.5, %v285_v57 }
 0x1a4   : > { %v1233_v63 = vsub.f32 %v379_v55, %v383_v59  ;;  %v288_v0 = vmul.f32 %v985_v52, %v876_v61  ;;  %v274_v2 = vpop.f32.mrb[3].mxu0 }
 0x1a5   : > { %v386_v3 = vsub.f32 %v378_v58, %v382_v60  ;;  %v287_v4 = vmul.f32 %v985_v52, %v274_v2  ;;  %877 = vmatprep.subr.bf16.mxu1 %v312_v62  ;;  %881 = vmatprep.mubr.msk.bf16.mxu1 %vm314_vm6, %v312_v62 }
 0x1a6   : > { %v385_v6 = vmul.f32 0.5, %v288_v0  ;;  %878 = vmatpush3.bf16.msra.mxu1 %v312_v62  ;;  %v311_v21 = vmul.f32 1.5, %v288_v0  ;;  %v519_v50 = vmul.f32 1.5, %v1233_v63 }
 0x1a7   : > { %v384_v7 = vmul.f32 0.5, %v287_v4  ;;  %v313_v8 = vpack.c.bf16 %v288_v0, %v287_v4  ;;  %v390_v9 = vpack.c.bf16 %v1233_v63, %v386_v3  ;;  %v310_v14 = vmul.f32 1.5, %v287_v4 }
 0x1a8   : > { %v389_v10 = vsub.f32 %v381_v1, %v385_v6  ;;  %v518_v41 = vmul.f32 1.5, %v386_v3 }
 0x1a9   : > { %v388_v11 = vsub.f32 %v380_v5, %v384_v7  ;;  %879 = vmatprep.subr.bf16.mxu1 %v313_v8 }
 0x1aa   : > { %880 = vmatpush3.bf16.msra.mxu1 %v313_v8  ;;  %v521_v45 = vmul.f32 1.5, %v389_v10 }
 0x1ab   : > { %v391_v12 = vpack.c.bf16 %v389_v10, %v388_v11  ;;  %v520_v38 = vmul.f32 1.5, %v388_v11 }
 0x1ad   : > { %882 = vmatmul.mubr.msk.bf16.vlgmr.msra.gmra.mrb[0].mxu1 %vm314_vm6, %v313_v8 }
 0x1ae   : > { %889 = vmatprep.mubr.msk.bf16.mxu1 %vm314_vm6, %v390_v9 }
 0x280   : > { %v883_v13 = vpop.f32.mrb[0].mxu1 }
 0x281   : > { %v372_v15 = vmul.f32 0.5, %v883_v13  ;;  %v355_v16 = vpop.f32.mrb[1].mxu1 }
 0x282   : > { %v370_v18 = vmul.f32 0.5, %v355_v16  ;;  %v884_v19 = vpop.f32.mrb[2].mxu1  ;;  %v713_v16 = vmul.f32 0.015625, %v1230_v48 }
 0x283   : > { %v376_v20 = vsub.f32 %v310_v14, %v372_v15  ;;  %v373_v22 = vmul.f32 0.5, %v884_v19  ;;  %v358_v23 = vpop.f32.mrb[3].mxu1 }
 0x284   : > { %v374_v24 = vsub.f32 %v308_v17, %v370_v18  ;;  %v371_v26 = vmul.f32 0.5, %v358_v23  ;;  %986 = vrsqrt.f32 %v713_v16  ;;  %vm716_vm7 = vcmp.eq.f32.partialorder %v713_v16, inf }
 0x285   : > { %v377_v27 = vsub.f32 %v311_v21, %v373_v22  ;;  %v451_v57 = vmul.f32 1.5, %v376_v20  ;;  %vm718_vm8 = vcmp.eq.f32.partialorder %v713_v16, 0.0 }
 0x286   : > { %v375_v28 = vsub.f32 %v309_v25, %v371_v26  ;;  %v449_v60 = vmul.f32 1.5, %v374_v24 }
 0x287   : > { %v393_v29 = vpack.c.bf16 %v377_v27, %v376_v20  ;;  %v452_v1 = vmul.f32 1.5, %v377_v27 }
 0x288   : > { %v392_v30 = vpack.c.bf16 %v375_v28, %v374_v24  ;;  %v450_v63 = vmul.f32 1.5, %v375_v28  ;;  %v719_v24 = vand.u32 2147483648, %v713_v16 }
 0x28a   : > { %885 = vmatprep.subr.bf16.mxu1 %v392_v30  ;;  %897 = vmatprep.mubr.msk.bf16.mxu0 %vm314_vm6, %v392_v30 }
 0x28b   : > { %886 = vmatpush3.bf16.msra.mxu1 %v392_v30 }
 0x28c   : > { %887 = vmatprep.subr.bf16.mxu1 %v393_v29 }
 0x28e   : > { %v987_v17 = vpop.eup %986 }
 0x28f   : > { %888 = vmatpush3.bf16.msra.mxu1 %v393_v29  ;;  %v715_v18 = vmul.f32 %v987_v17, %v713_v16 }
 0x290   : > { %901 = vmatprep.subr.bf16.mxu1 %v390_v9 }
 0x291   : > { %v717_v22 = vsel %vm716_vm7, %v713_v16, %v715_v18 }
 0x292   : > { %890 = vmatmul.mubr.msk.bf16.vlgmr.msra.gmra.mrb[4].mxu1 %vm314_vm6, %v391_v12  ;;  %v720_v48 = vsel %vm718_vm8, %v719_v24, %v717_v22 }
 0x293   : > { %902 = vmatpush3.bf16.msra.mxu1 %v390_v9 }
 0x294   : > { %903 = vmatprep.subr.bf16.mxu1 %v391_v12 }
 0x297   : > { %904 = vmatpush3.bf16.msra.mxu1 %v391_v12 }
 0x365   : > { %v891_v31 = vpop.f32.mrb[4].mxu1 }
 0x366   : > { %v434_v32 = vpop.f32.mrb[5].mxu1 }
 0x367   : > { %v892_v33 = vpop.f32.mrb[6].mxu1 }
 0x368   : > { %v454_v34 = vpack.c.bf16 %v892_v33, %v891_v31  ;;  %v437_v35 = vpop.f32.mrb[7].mxu1 }
 0x369   : > { %v453_v36 = vpack.c.bf16 %v437_v35, %v434_v32 }
 0x36b   : > { %893 = vmatprep.subr.bf16.mxu0 %v453_v36  ;;  %905 = vmatprep.mubr.msk.bf16.mxu1 %vm314_vm6, %v453_v36 }
 0x36c   : > { %894 = vmatpush3.bf16.msra.mxu0 %v453_v36  ;;  %906 = vmatmul.mubr.msk.bf16.vlgmr.msra.gmra.mrb[8].mxu1 %vm314_vm6, %v454_v34 }
 0x36d   : > { %895 = vmatprep.subr.bf16.mxu0 %v454_v34 }
 0x370   : > { %896 = vmatpush3.bf16.msra.mxu0 %v454_v34 }
 0x373   : > { %898 = vmatmul.mubr.msk.bf16.vlgmr.msra.gmra.mrb[4].mxu0 %vm314_vm6, %v393_v29 }
 0x43f   : > { %v907_v37 = vpop.f32.mrb[8].mxu1 }
 0x440   : > { %v579_v39 = vmul.f32 0.5, %v907_v37  ;;  %v562_v40 = vpop.f32.mrb[9].mxu1 }
 0x441   : > { %v577_v42 = vmul.f32 0.5, %v562_v40  ;;  %v908_v43 = vpop.f32.mrb[10].mxu1 }
 0x442   : > { %v583_v44 = vsub.f32 %v520_v38, %v579_v39  ;;  %v580_v46 = vmul.f32 0.5, %v908_v43  ;;  %v565_v47 = vpop.f32.mrb[11].mxu1 }
 0x443   : > { %v581_v49 = vsub.f32 %v518_v41, %v577_v42  ;;  %v578_v51 = vmul.f32 0.5, %v565_v47 }
 0x444   : > { %v584_v52 = vsub.f32 %v521_v45, %v580_v46 }
 0x445   : > { %v582_v53 = vsub.f32 %v519_v50, %v578_v51 }
 0x446   : > { %v590_v54 = vpack.c.bf16 %v584_v52, %v583_v44  ;;  %v899_v55 = vpop.f32.mrb[4].mxu0 }
 0x447   : > { %v589_v56 = vpack.c.bf16 %v582_v53, %v581_v49  ;;  %v512_v58 = vmul.f32 0.5, %v899_v55  ;;  %v495_v59 = vpop.f32.mrb[5].mxu0 }
 0x448   : > { %v510_v61 = vmul.f32 0.5, %v495_v59  ;;  %v900_v62 = vpop.f32.mrb[6].mxu0 }
 0x449   : > { %v516_v0 = vsub.f32 %v451_v57, %v512_v58  ;;  %v513_v2 = vmul.f32 0.5, %v900_v62  ;;  %v498_v3 = vpop.f32.mrb[7].mxu0  ;;  %913 = vmatprep.mubr.msk.bf16.mxu0 %vm314_vm6, %v589_v56 }
 0x44a   : > { %v514_v4 = vsub.f32 %v449_v60, %v510_v61  ;;  %v511_v5 = vmul.f32 0.5, %v498_v3 }
 0x44b   : > { %v517_v6 = vsub.f32 %v452_v1, %v513_v2  ;;  %v587_v20 = vmul.f32 1.5, %v516_v0 }
 0x44c   : > { %v515_v7 = vsub.f32 %v450_v63, %v511_v5  ;;  %v585_v25 = vmul.f32 1.5, %v514_v4 }
 0x44d   : > { %v592_v8 = vpack.c.bf16 %v517_v6, %v516_v0  ;;  %v588_v29 = vmul.f32 1.5, %v517_v6 }
 0x44e   : > { %v591_v9 = vpack.c.bf16 %v515_v7, %v514_v4  ;;  %v586_v33 = vmul.f32 1.5, %v515_v7 }
 0x450   : > { %909 = vmatprep.subr.bf16.mxu0 %v591_v9  ;;  %921 = vmatprep.mubr.msk.bf16.mxu1 %vm314_vm6, %v591_v9 }
 0x451   : > { %910 = vmatpush3.bf16.msra.mxu0 %v591_v9 }
 0x452   : > { %911 = vmatprep.subr.bf16.mxu0 %v592_v8 }
 0x455   : > { %912 = vmatpush3.bf16.msra.mxu0 %v592_v8 }
 0x458   : > { %914 = vmatmul.mubr.msk.bf16.vlgmr.msra.gmra.mrb[8].mxu0 %vm314_vm6, %v590_v54 }
 0x52b   : > { %v915_v10 = vpop.f32.mrb[8].mxu0 }
 0x52c   : > { %v633_v11 = vpop.f32.mrb[9].mxu0 }
 0x52d   : > { %v916_v12 = vpop.f32.mrb[10].mxu0 }
 0x52e   : > { %v649_v13 = vpack.c.bf16 %v916_v12, %v915_v10  ;;  %v636_v14 = vpop.f32.mrb[11].mxu0 }
 0x52f   : > { %v648_v15 = vpack.c.bf16 %v636_v14, %v633_v11 }
 0x531   : > { %917 = vmatprep.subr.bf16.mxu1 %v648_v15 }
 0x532   : > { %918 = vmatpush3.bf16.msra.mxu1 %v648_v15 }
 0x533   : > { %919 = vmatprep.subr.bf16.mxu1 %v649_v13 }
 0x536   : > { %920 = vmatpush3.bf16.msra.mxu1 %v649_v13 }
 0x539   : > { %922 = vmatmul.mubr.msk.bf16.vlgmr.msra.gmra.mrb[12].mxu1 %vm314_vm6, %v592_v8 }
 0x60c   : > { %v923_v19 = vpop.f32.mrb[12].mxu1 }
 0x60d   : > { %v707_v21 = vmul.f32 0.5, %v923_v19  ;;  %v690_v23 = vpop.f32.mrb[13].mxu1 }
 0x60e   : > { %v705_v26 = vmul.f32 0.5, %v690_v23  ;;  %v924_v27 = vpop.f32.mrb[14].mxu1 }
 0x60f   : > { %v711_v28 = vsub.f32 %v587_v20, %v707_v21  ;;  %v708_v30 = vmul.f32 0.5, %v924_v27  ;;  %v693_v31 = vpop.f32.mrb[15].mxu1 }
 0x610   : > { %v709_v32 = vsub.f32 %v585_v25, %v705_v26  ;;  %v706_v34 = vmul.f32 0.5, %v693_v31 }
 0x611   : > { %v723_v35 = vmul.f32 %v720_v48, %v711_v28  ;;  %v712_v36 = vsub.f32 %v588_v29, %v708_v30 }
 0x612   : > { %v721_v37 = vmul.f32 %v720_v48, %v709_v32  ;;  %v710_v38 = vsub.f32 %v586_v33, %v706_v34 }
 0x613   : > { %727 = vst.msk [vmem:[#allocation5 + $0x10] sm:$0xff] %vm314_vm6, %v723_v35  ;;  %v724_v39 = vmul.f32 %v720_v48, %v712_v36 }
 0x614   : > { %725 = vst.msk [vmem:[#allocation5] sm:$0xff] %vm314_vm6, %v721_v37  ;;  %v722_v40 = vmul.f32 %v720_v48, %v710_v38 }
 0x615   : > { %728 = vst.msk [vmem:[#allocation5 + $0x18] sm:$0xff] %vm314_vm6, %v724_v39 }
 0x616   : > { %726 = vst.msk [vmem:[#allocation5 + $0x8] sm:$0xff] %vm314_vm6, %v722_v40 }
 0x617   : > { %1031 = shalt.err (!%p1028_p0)
}
 0x618   : > { %s1032_s27 = scalar_lea.hbm %s1255_s26, 512  ;;  %s1036_s30 = scalar_lea.hbm %s1302_s1, 1024 }
 0x619   : > { %p1033_p2 = scmp.ne.s32.totalorder %s1255_s26, %s1032_s27  ;;  %p1037_p13 = scmp.lt.u32.totalorder %s1255_s26, %s1302_s1 }
 0x61a   : > { %p1038_p1 = scmp.lt.u32.totalorder %s1036_s30, %s1032_s27  ;;  %p1040_p7 = scmp.lt.u32.totalorder %s1032_s27, %s1255_s26 }
 0x61b   : > { %p1034_p3 = pnand %p1033_p2, %p1311_p9 }
 0x61c   : > { %p1039_p5 = por %p1038_p1, %p1037_p13 }
 0x61d   : > { %p1035_p4 = pneg %p1034_p3 }
 0x61e   : > { %p1041_p10 = por %p1040_p7, %p1039_p5 }
 0x620   : > { %p1042_p11 = pnand %p1041_p10, %p1035_p4 }
 0x622   : > { %1045 = shalt.err (!%p1042_p11)
}
 0x623   : > { %s1091_s4 = smov 128   ;;  %s1092_s5 = smov 8  }
 0x624   : > { %939 = dma.vmem_to_hbm [thread:$0]  (%p1311_p9), %s1257_s23, 512, %s1255_s26, [#allocation4], %s1091_s4, %s1091_s4, %s1092_s5  }
 0x625   : > { %1067 = dma.done.wait (%p1311_p9), [#allocation4], 512  }
 0x626   : > { %1069 = vsyncadd (%p1311_p9), [#allocation4], 4294966784 }
 0x627 PF: > { %p12_p6 = scmp.ge.s32.totalorder %s1125_s11, 4   ;;  %s1312_s6 = smov %s1076_s7 }
 0x628   : > { %s1313_s7 = smov %s1080_s8  ;;  %s1314_s8 = smov %s1135_s14 }
 0x629   : > { %s1315_s9 = smov %s1125_s11  ;;  %14 = sbr.rel (!%p12_p6) target bundleno = 4 (0x4), region = 62 }
 0x630   :  { %754 = vsyncpa [#allocation3], 1 }
 0x631   :  { %756 = vsyncpa [#allocation3 + $0x1], 1 }
 0x632   :  { %757 = vsyncpa [#allocation4], 1 }
 0x633   :  { %759 = vsyncpa [#allocation4 + $0x1], 1 }

// kernel: tpu_custom_call.1
= control target key start
LH: loop header
LB: loop body
LE: loop exit
PB: predicated region body
PF: predicated region fallthrough
CT: control target
= control target key end

     0   :  { %6 = vsyncpa [#allocation3], 0  ;;  %s1355_s0 = inlined_call_operand.hbm [shape: f32[2,32,64], index: 0, kind: input, shape index: {}]   ;;  %s1356_s1 = inlined_call_operand.hbm [shape: f32[2,32,32], index: 1, kind: output, shape index: {}]  }
   0x1   :  { %8 = vsyncpa [#allocation3 + $0x1], 0 }
   0x2   :  { %9 = vsyncpa [#allocation4], 0 }
   0x3   :  { %11 = vsyncpa [#allocation4 + $0x1], 0  ;;  %s1139_s6 = smov 0   ;;  %s1141_s7 = smov 0  }
   0x4   :  { %s1143_s8 = smov 0   ;;  %s1145_s9 = smov 0  }
   0x5 LB: > { %s1160_s10 = sadd.s32 4294967295, %s1120_s9   ;;  %s823_s11 = sadd.s32 4294967294, %s1120_s9   ;;  %s1120_s9 = sphi %s1145_s9, %s1371_s9   ;;  %s1116_s8 = sphi %s1143_s8, %s1370_s8   ;;  %s1112_s7 = sphi %s1141_s7, %s1369_s7   ;;  %s1108_s6 = sphi %s1139_s6, %s1368_s6  }
   0x6   : > { %s1164_s12 = sadd.s32 1, %s1120_s9   ;;  %s24_s13 = sadd.s32 1, %s1116_s8 }
   0x7   : > { %s21_s14 = ssub.s32 %s1120_s9, %s1164_s12  ;;  %p31_p0 = scmp.ne.s32.totalorder %s1116_s8, %s1112_s7 }
   0x8   : > { %p22_p1 = scmp.eq.s32.totalorder %s21_s14, 0  ;;  %p32_p2 = scmp.eq.s32.totalorder %s1120_s9, 0 }
   0x9   : > { %p37_p3 = scmp.ne.s32.totalorder %s1112_s7, %s1108_s6  ;;  %p38_p4 = scmp.eq.s32.totalorder %s1160_s10, 0 }
   0xa   : > { %s1176_s15 = scalar_select %p22_p1, %s1116_s8, %s24_s13  }
   0xb   : > { %p1178_p5 = por %p32_p2, %p31_p0  ;;  %p1182_p6 = por %p38_p4, %p37_p3 }
   0xc   : > { %p61_p7 = scmp.eq.s32.totalorder %s1160_s10, 1  ;;  %p67_p8 = scmp.eq.s32.totalorder %s823_s11, 1 }
   0xd   : > { %p981_p10 = scmp.lt.s32.totalorder %s1120_s9, 2  ;;  %s87_s20 = sand.u32 1, %s1116_s8  }
   0xe   : > { %p1189_p11 = por %p61_p7, %p31_p0  ;;  %p1193_p12 = por %p67_p8, %p37_p3 }
   0xf   : > { %s861_s21 = sshll.u32 %s1120_s9, 9  ;;  %s826_s22 = sshll.u32 %s87_s20, 5 }
  0x10   : > { %s1360_s18 = scalar_select %p1189_p11, 1, 0 }
  0x11   : > { %s1361_s19 = scalar_select %p1193_p12, 1, 0 }
  0x12   : > { %s1202_s25 = scalar_lea.hbm %s1355_s0, %s861_s21  ;;  %s91_s26 = scalar_lea.vmem [#allocation2], %s826_s22 }
  0x13   : > { %s98_s27 = sshll.u32 %s91_s26, 4  ;;  %p1206_p13 = pnand %p981_p10, %p1178_p5  ;;  %s1210_s27 = int_to_ptr.vmem [resolvable:$true] %s98_s27 }
  0x14   : > { %s1212_s29 = scalar_lea.sflag [#allocation3], %s87_s20  ;;  %s1024_s30 = scalar_lea.hbm %s1202_s25, 512 }
  0x15   : > { %p1025_p0 = scmp.ne.s32.totalorder %s1202_s25, %s1024_s30  ;;  %p1026_p1 = pneg %p1206_p13 }
  0x16   : > { %s1029_s4 = scalar_lea.hbm %s1355_s0, 1024  ;;  %p1030_p4 = scmp.lt.u32.totalorder %s1202_s25, %s1355_s0 }
  0x17   : > { %p1027_p2 = pnand %p1026_p1, %p1025_p0  ;;  %p1031_p5 = scmp.lt.u32.totalorder %s1029_s4, %s1024_s30 }
  0x18   : > { %p1033_p8 = scmp.lt.u32.totalorder %s1024_s30, %s1202_s25 }
  0x19   : > { %p1028_p3 = pneg %p1027_p2  ;;  %p1032_p7 = por %p1031_p5, %p1030_p4 }
  0x1b   : > { %p1034_p10 = por %p1033_p8, %p1032_p7 }
  0x1d   : > { %p1035_p9 = pnand %p1034_p10, %p1028_p3 }
  0x1f   : > { %1038 = shalt.err (!%p1035_p9)
}
  0x20   : > { %s1039_s13 = scalar_lea.vmem %s1210_s27, 512  ;;  %s1122_s14 = smov [#allocation2]  }
  0x21   : > { %p1040_p0 = scmp.ne.s32.totalorder %s1210_s27, %s1039_s13  ;;  %s1044_s16 = sshll.u32 %s1122_s14, 4  ;;  %s1045_s16 = int_to_ptr.vmem [resolvable:$false] %s1044_s16 }
  0x22   : > { %s1046_s20 = scalar_lea.vmem %s1045_s16, 1024  ;;  %p1047_p11 = scmp.lt.s32.totalorder %s1210_s27, %s1045_s16 }
  0x23   : > { %p1042_p2 = pnand %p1040_p0, %p1026_p1  ;;  %p1048_p4 = scmp.lt.s32.totalorder %s1046_s20, %s1039_s13 }
  0x25   : > { %p1043_p12 = pneg %p1042_p2  ;;  %p1049_p5 = por %p1048_p4, %p1047_p11 }
  0x27   : > { %p1050_p7 = pnand %p1049_p5, %p1043_p12 }
  0x29   : > { %1053 = shalt.err (!%p1050_p7)
}
  0x2a   : > { %s1123_s21 = smov 128   ;;  %s1124_s22 = smov 8  }
  0x2b   : > { %976 = dma.hbm_to_vmem [thread:$0]  (!%p1206_p13), %s1202_s25, 512, %s1210_s27, %s1212_s29, %s1123_s21, %s1123_s21, %s1124_s22  }
  0x2c   : > { %p829_p9 = scmp.ge.s32.totalorder %s1120_s9, 1  ;;  %p106_p1 = scmp.lt.s32.totalorder %s1120_s9, 3 }
  0x2e   : > { %p107_p3 = pnand %p829_p9, %p106_p1 }
  0x2f   : > { %s1243_s23 = sand.u32 (!%p107_p3), 1, %s1112_s7  }
  0x30   : > { %110 = sbr.rel (%p107_p3) target bundleno = 1577 (0x629), region = 24  ;;  %s830_s24 = sshll.u32 (!%p107_p3), %s1243_s23, 5 }
  0x31   : > { %s113_s26 = scalar_lea.sflag (!%p107_p3), [#allocation3], %s1243_s23  ;;  %s116_s30 = scalar_lea.vmem (!%p107_p3), [#allocation2], %s830_s24 }
  0x37   : > { %1099 = dma.done.wait (%p1182_p6), %s113_s26, 512  }
  0x38   : > { %1101 = vsyncadd (%p1182_p6), %s113_s26, 4294966784  ;;  %vm140_vm0 = vcmask 523264   ;;  %v136_v1 = vld [vmem:[%s116_s30] sm:$0xff]  ;;  %v138_v2 = vld [vmem:[%s116_s30 + $0x10] sm:$0xff]  ;;  %v296_v34 = vlaneseq  ;;  %v1125_v39 = vmov 0.0   ;;  %vm321_vm6 = vcmask 261120  }
  0x39   : > { %vm1255_vm1 = vmpackc.low %vm140_vm0, %vm140_vm0  ;;  %v137_v3 = vld [vmem:[%s116_s30 + $0x8] sm:$0xff]  ;;  %v141_v4 = vsel %vm140_vm0, %v136_v1, 0.0  ;;  %v147_v5 = vsel %vm140_vm0, %v138_v2, 0.0  ;;  %v139_v6 = vld [vmem:[%s116_s30 + $0x18] sm:$0xff]  ;;  %s862_s17 = sshll.u32 %s1160_s10, 9  ;;  %s134_s25 = scalar_lea.vmem [#allocation5], %s830_s24 }
  0x3a   : > { %v957_v7 = vpack.c.bf16 %v137_v3, %v136_v1  ;;  %142 = vadd.xlane.f32.xlu0 %v141_v4  ;;  %148 = vadd.xlane.f32.xlu1 %v147_v5  ;;  %v144_v8 = vsel %vm140_vm0, %v137_v3, 0.0  ;;  %v150_v9 = vsel %vm140_vm0, %v139_v6, 0.0  ;;  %v963_v10 = vpack.c.bf16 %v139_v6, %v138_v2  ;;  %s750_s27 = sshll.u32 %s134_s25, 4  ;;  %s1306_s2 = scalar_lea.hbm %s1356_s1, %s862_s17  ;;  %s1308_s27 = int_to_ptr.vmem [resolvable:$true] %s750_s27 }
  0x3b   : > { %v297_v35 = vshrl.u32 %v296_v34, 7  ;;  %v302_v36 = vand.u32 127, %v296_v34  ;;  %s737_s10 = scalar_lea.sflag [#allocation4], %s1243_s23  ;;  %s1054_s3 = scalar_lea.vmem %s1308_s27, 512 }
  0x3c   : > { %959 = vmatprep.subr.msk.bf16.mxu0 %vm1255_vm1, %v957_v7  ;;  %p1055_p6 = scmp.ne.s32.totalorder %s1308_s27, %s1054_s3  ;;  %p1365_p11 = scmp.ne.s32.totalorder %s1360_s18, 0 }
  0x3d   : > { %962 = vmatpush3.bf16.xpose.msk.msra.mxu0 %vm1255_vm1, %v957_v7  ;;  %v300_v37 = vadd.s32 24, %v297_v35  ;;  %v299_v38 = vadd.s32 16, %v297_v35  ;;  %v298_v49 = vadd.s32 8, %v297_v35  ;;  %vm303_vm5 = vcmp.eq.s32.totalorder %v297_v35, %v302_v36  ;;  %s1126_s4 = smov [#allocation5]  }
  0x3e   : > { %145 = vadd.xlane.f32.xlu0 %v144_v8  ;;  %151 = vadd.xlane.f32.xlu1 %v150_v9  ;;  %v840_v51 = vsel %vm303_vm5, 1.0, %v1125_v39  ;;  %p1056_p12 = pnand %p1055_p6, %p1365_p11  ;;  %s1058_s5 = sshll.u32 %s1126_s4, 4  ;;  %s1059_s5 = int_to_ptr.vmem [resolvable:$false] %s1058_s5 }
  0x3f   : > { %965 = vmatprep.subr.msk.bf16.mxu0 %vm1255_vm1, %v963_v10  ;;  %vm306_vm2 = vcmp.eq.s32.totalorder %v300_v37, %v302_v36  ;;  %vm305_vm3 = vcmp.eq.s32.totalorder %v299_v38, %v302_v36  ;;  %vm304_vm4 = vcmp.eq.s32.totalorder %v298_v49, %v302_v36  ;;  %v385_v58 = vmul.f32 1.5, %v840_v51  ;;  %s1060_s11 = scalar_lea.vmem %s1059_s5, 1024  ;;  %p1061_p8 = scmp.lt.s32.totalorder %s1308_s27, %s1059_s5 }
  0x40   : > { %v843_v40 = vsel %vm306_vm2, 1.0, %v1125_v39  ;;  %v842_v41 = vsel %vm305_vm3, 1.0, %v1125_v39  ;;  %v841_v50 = vsel %vm304_vm4, 1.0, %v1125_v39  ;;  %p1057_p13 = pneg %p1056_p12  ;;  %p1062_p10 = scmp.lt.s32.totalorder %s1060_s11, %s1054_s3 }
  0x41   : > { %v386_v55 = vmul.f32 1.5, %v841_v50  ;;  %v387_v5 = vmul.f32 1.5, %v842_v41 }
  0x42   : > { %p1063_p0 = por %p1062_p10, %p1061_p8 }
  0x44   : > { %p1064_p2 = pnand %p1063_p0, %p1057_p13 }
  0x45   : > { %968 = vmatpush3.bf16.xpose.msk.msra.mxu0 %vm1255_vm1, %v963_v10 }
  0xc7   : > { %v143_v11 = vpop.xlane.xlu0 %142  ;;  %v149_v12 = vpop.xlane.xlu1 %148 }
  0xc8   : > { %v154_v13 = vmul.f32 0.015625, %v143_v11  ;;  %v156_v14 = vmul.f32 0.015625, %v149_v12 }
  0xca   : > { %v158_v15 = vsub.f32 %v136_v1, %v154_v13  ;;  %v160_v18 = vsub.f32 %v138_v2, %v156_v14 }
  0xcb   : > { %v146_v16 = vpop.xlane.xlu0 %145  ;;  %v152_v17 = vpop.xlane.xlu1 %151 }
  0xcc   : > { %v155_v19 = vmul.f32 0.015625, %v146_v16  ;;  %903 = vmatprep.mubr.msk.f32.mxu0 %vm140_vm0, %v158_v15  ;;  %v157_v20 = vmul.f32 0.015625, %v152_v17  ;;  %v162_v22 = vmul.f32 %v158_v15, %v136_v1  ;;  %v164_v24 = vmul.f32 %v160_v18, %v138_v2 }
  0xcd   : > { %v388_v1 = vmul.f32 1.5, %v843_v40 }
  0xce   : > { %v159_v21 = vsub.f32 %v137_v3, %v155_v19  ;;  %v161_v23 = vsub.f32 %v139_v6, %v157_v20  ;;  %v166_v27 = vsel %vm140_vm0, %v162_v22, 0.0  ;;  %v169_v30 = vsel %vm140_vm0, %v164_v24, 0.0 }
  0xd0   : > { %v163_v25 = vmul.f32 %v159_v21, %v137_v3  ;;  %v165_v26 = vmul.f32 %v161_v23, %v139_v6  ;;  %904 = vmatmul.mubr.msk.f32.vlgmr.msra.gmra.mrb[0].mxu0 %vm140_vm0, %v159_v21 }
  0xd1   : > { %906 = vmatprep.mubr.msk.f32.mxu0 %vm140_vm0, %v160_v18 }
  0xd2   : > { %v167_v28 = vsel %vm140_vm0, %v163_v25, 0.0  ;;  %v171_v31 = vsel %vm140_vm0, %v165_v26, 0.0 }
  0xd3   : > { %v168_v29 = vadd.f32 %v167_v28, %v166_v27 }
  0xd4   : > { %907 = vmatmul.mubr.msk.f32.gmra.mrb[2].mxu0 %vm140_vm0, %v161_v23 }
  0xd5   : > { %v170_v32 = vadd.f32 %v169_v30, %v168_v29 }
  0xd7   : > { %v172_v33 = vadd.f32 %v171_v31, %v170_v32 }
  0xd9   : > { %173 = vadd.xlane.f32.xlu0 %v172_v33 }
 0x166   : > { %v174_v42 = vpop.xlane.xlu0 %173 }
 0x167   : > { %v175_v43 = vrot.slane %v174_v42, 4 }
 0x169   : > { %v176_v44 = vadd.f32 %v175_v43, %v174_v42 }
 0x16b   : > { %v177_v45 = vrot.slane %v176_v44, 2 }
 0x16d   : > { %v178_v46 = vadd.f32 %v177_v45, %v176_v44 }
 0x16f   : > { %v179_v47 = vrot.slane %v178_v46, 1 }
 0x171   : > { %v1279_v48 = vadd.f32 %v179_v47, %v178_v46 }
 0x173   : > { %1020 = vrcp.f32 %v1279_v48 }
 0x17d   : > { %v1021_v52 = vpop.eup %1020 }
 0x1a3   : > { %v905_v53 = vpop.f32.mrb[0].mxu0 }
 0x1a4   : > { %v293_v54 = vmul.f32 %v1021_v52, %v905_v53  ;;  %v271_v56 = vpop.f32.mrb[1].mxu0 }
 0x1a5   : > { %v292_v57 = vmul.f32 %v1021_v52, %v271_v56 }
 0x1a6   : > { %v390_v59 = vmul.f32 0.5, %v293_v54  ;;  %v316_v25 = vmul.f32 1.5, %v293_v54 }
 0x1a7   : > { %v389_v60 = vmul.f32 0.5, %v292_v57  ;;  %v908_v61 = vpop.f32.mrb[2].mxu0  ;;  %v319_v62 = vpack.c.bf16 %v293_v54, %v292_v57  ;;  %v315_v17 = vmul.f32 1.5, %v292_v57 }
 0x1a8   : > { %v1282_v63 = vsub.f32 %v386_v55, %v390_v59  ;;  %v295_v0 = vmul.f32 %v1021_v52, %v908_v61  ;;  %v281_v2 = vpop.f32.mrb[3].mxu0 }
 0x1a9   : > { %v393_v3 = vsub.f32 %v385_v58, %v389_v60  ;;  %v294_v4 = vmul.f32 %v1021_v52, %v281_v2  ;;  %909 = vmatprep.subr.bf16.mxu1 %v319_v62  ;;  %913 = vmatprep.mubr.msk.bf16.mxu1 %vm321_vm6, %v319_v62 }
 0x1aa   : > { %v392_v6 = vmul.f32 0.5, %v295_v0  ;;  %910 = vmatpush3.bf16.msra.mxu1 %v319_v62  ;;  %v318_v21 = vmul.f32 1.5, %v295_v0  ;;  %v526_v50 = vmul.f32 1.5, %v1282_v63 }
 0x1ab   : > { %v391_v7 = vmul.f32 0.5, %v294_v4  ;;  %v320_v8 = vpack.c.bf16 %v295_v0, %v294_v4  ;;  %v397_v9 = vpack.c.bf16 %v1282_v63, %v393_v3  ;;  %v317_v14 = vmul.f32 1.5, %v294_v4 }
 0x1ac   : > { %v396_v10 = vsub.f32 %v388_v1, %v392_v6  ;;  %v525_v41 = vmul.f32 1.5, %v393_v3 }
 0x1ad   : > { %v395_v11 = vsub.f32 %v387_v5, %v391_v7  ;;  %911 = vmatprep.subr.bf16.mxu1 %v320_v8 }
 0x1ae   : > { %912 = vmatpush3.bf16.msra.mxu1 %v320_v8  ;;  %v528_v45 = vmul.f32 1.5, %v396_v10 }
 0x1af   : > { %v398_v12 = vpack.c.bf16 %v396_v10, %v395_v11  ;;  %v527_v38 = vmul.f32 1.5, %v395_v11 }
 0x1b1   : > { %914 = vmatmul.mubr.msk.bf16.vlgmr.msra.gmra.mrb[0].mxu1 %vm321_vm6, %v320_v8 }
 0x1b2   : > { %921 = vmatprep.mubr.msk.bf16.mxu1 %vm321_vm6, %v397_v9 }
 0x284   : > { %v915_v13 = vpop.f32.mrb[0].mxu1 }
 0x285   : > { %v379_v15 = vmul.f32 0.5, %v915_v13  ;;  %v362_v16 = vpop.f32.mrb[1].mxu1 }
 0x286   : > { %v377_v18 = vmul.f32 0.5, %v362_v16  ;;  %v916_v19 = vpop.f32.mrb[2].mxu1  ;;  %v720_v16 = vmul.f32 0.015625, %v1279_v48 }
 0x287   : > { %v383_v20 = vsub.f32 %v317_v14, %v379_v15  ;;  %v380_v22 = vmul.f32 0.5, %v916_v19  ;;  %v365_v23 = vpop.f32.mrb[3].mxu1 }
 0x288   : > { %v381_v24 = vsub.f32 %v315_v17, %v377_v18  ;;  %v378_v26 = vmul.f32 0.5, %v365_v23  ;;  %1022 = vrsqrt.f32 %v720_v16  ;;  %vm723_vm7 = vcmp.eq.f32.partialorder %v720_v16, inf }
 0x289   : > { %v384_v27 = vsub.f32 %v318_v21, %v380_v22  ;;  %v458_v57 = vmul.f32 1.5, %v383_v20  ;;  %vm725_vm8 = vcmp.eq.f32.partialorder %v720_v16, 0.0 }
 0x28a   : > { %v382_v28 = vsub.f32 %v316_v25, %v378_v26  ;;  %v456_v60 = vmul.f32 1.5, %v381_v24 }
 0x28b   : > { %v400_v29 = vpack.c.bf16 %v384_v27, %v383_v20  ;;  %v459_v1 = vmul.f32 1.5, %v384_v27 }
 0x28c   : > { %v399_v30 = vpack.c.bf16 %v382_v28, %v381_v24  ;;  %v457_v63 = vmul.f32 1.5, %v382_v28  ;;  %v726_v24 = vand.u32 2147483648, %v720_v16 }
 0x28e   : > { %917 = vmatprep.subr.bf16.mxu1 %v399_v30  ;;  %929 = vmatprep.mubr.msk.bf16.mxu0 %vm321_vm6, %v399_v30 }
 0x28f   : > { %918 = vmatpush3.bf16.msra.mxu1 %v399_v30 }
 0x290   : > { %919 = vmatprep.subr.bf16.mxu1 %v400_v29 }
 0x292   : > { %v1023_v17 = vpop.eup %1022 }
 0x293   : > { %920 = vmatpush3.bf16.msra.mxu1 %v400_v29  ;;  %v722_v18 = vmul.f32 %v1023_v17, %v720_v16 }
 0x294   : > { %933 = vmatprep.subr.bf16.mxu1 %v397_v9 }
 0x295   : > { %v724_v22 = vsel %vm723_vm7, %v720_v16, %v722_v18 }
 0x296   : > { %922 = vmatmul.mubr.msk.bf16.vlgmr.msra.gmra.mrb[4].mxu1 %vm321_vm6, %v398_v12 }
 0x297   : > { %934 = vmatpush3.bf16.msra.mxu1 %v397_v9 }
 0x298   : > { %935 = vmatprep.subr.bf16.mxu1 %v398_v12 }
 0x29b   : > { %936 = vmatpush3.bf16.msra.mxu1 %v398_v12 }
 0x369   : > { %v923_v31 = vpop.f32.mrb[4].mxu1 }
 0x36a   : > { %v441_v32 = vpop.f32.mrb[5].mxu1 }
 0x36b   : > { %v924_v33 = vpop.f32.mrb[6].mxu1 }
 0x36c   : > { %v461_v34 = vpack.c.bf16 %v924_v33, %v923_v31  ;;  %v444_v35 = vpop.f32.mrb[7].mxu1  ;;  %v727_v31 = vsel %vm725_vm8, %v726_v24, %v724_v22 }
 0x36d   : > { %v460_v36 = vpack.c.bf16 %v444_v35, %v441_v32 }
 0x36f   : > { %925 = vmatprep.subr.bf16.mxu0 %v460_v36  ;;  %937 = vmatprep.mubr.msk.bf16.mxu1 %vm321_vm6, %v460_v36 }
 0x370   : > { %926 = vmatpush3.bf16.msra.mxu0 %v460_v36  ;;  %938 = vmatmul.mubr.msk.bf16.vlgmr.msra.gmra.mrb[8].mxu1 %vm321_vm6, %v461_v34 }
 0x371   : > { %927 = vmatprep.subr.bf16.mxu0 %v461_v34 }
 0x374   : > { %928 = vmatpush3.bf16.msra.mxu0 %v461_v34 }
 0x377   : > { %930 = vmatmul.mubr.msk.bf16.vlgmr.msra.gmra.mrb[4].mxu0 %vm321_vm6, %v400_v29 }
 0x443   : > { %v939_v37 = vpop.f32.mrb[8].mxu1 }
 0x444   : > { %v586_v39 = vmul.f32 0.5, %v939_v37  ;;  %v569_v40 = vpop.f32.mrb[9].mxu1 }
 0x445   : > { %v584_v42 = vmul.f32 0.5, %v569_v40  ;;  %v940_v43 = vpop.f32.mrb[10].mxu1 }
 0x446   : > { %v590_v44 = vsub.f32 %v527_v38, %v586_v39  ;;  %v587_v46 = vmul.f32 0.5, %v940_v43  ;;  %v572_v47 = vpop.f32.mrb[11].mxu1 }
 0x447   : > { %v588_v49 = vsub.f32 %v525_v41, %v584_v42  ;;  %v585_v51 = vmul.f32 0.5, %v572_v47 }
 0x448   : > { %v591_v52 = vsub.f32 %v528_v45, %v587_v46 }
 0x449   : > { %v589_v53 = vsub.f32 %v526_v50, %v585_v51 }
 0x44a   : > { %v597_v54 = vpack.c.bf16 %v591_v52, %v590_v44  ;;  %v931_v55 = vpop.f32.mrb[4].mxu0 }
 0x44b   : > { %v596_v56 = vpack.c.bf16 %v589_v53, %v588_v49  ;;  %v519_v58 = vmul.f32 0.5, %v931_v55  ;;  %v502_v59 = vpop.f32.mrb[5].mxu0 }
 0x44c   : > { %v517_v61 = vmul.f32 0.5, %v502_v59  ;;  %v932_v62 = vpop.f32.mrb[6].mxu0 }
 0x44d   : > { %v523_v0 = vsub.f32 %v458_v57, %v519_v58  ;;  %v520_v2 = vmul.f32 0.5, %v932_v62  ;;  %v505_v3 = vpop.f32.mrb[7].mxu0  ;;  %945 = vmatprep.mubr.msk.bf16.mxu0 %vm321_vm6, %v596_v56 }
 0x44e   : > { %v521_v4 = vsub.f32 %v456_v60, %v517_v61  ;;  %v518_v5 = vmul.f32 0.5, %v505_v3 }
 0x44f   : > { %v524_v6 = vsub.f32 %v459_v1, %v520_v2  ;;  %v594_v20 = vmul.f32 1.5, %v523_v0 }
 0x450   : > { %v522_v7 = vsub.f32 %v457_v63, %v518_v5  ;;  %v592_v25 = vmul.f32 1.5, %v521_v4 }
 0x451   : > { %v599_v8 = vpack.c.bf16 %v524_v6, %v523_v0  ;;  %v595_v29 = vmul.f32 1.5, %v524_v6 }
 0x452   : > { %v598_v9 = vpack.c.bf16 %v522_v7, %v521_v4  ;;  %v593_v33 = vmul.f32 1.5, %v522_v7 }
 0x454   : > { %941 = vmatprep.subr.bf16.mxu0 %v598_v9  ;;  %953 = vmatprep.mubr.msk.bf16.mxu1 %vm321_vm6, %v598_v9 }
 0x455   : > { %942 = vmatpush3.bf16.msra.mxu0 %v598_v9 }
 0x456   : > { %943 = vmatprep.subr.bf16.mxu0 %v599_v8 }
 0x459   : > { %944 = vmatpush3.bf16.msra.mxu0 %v599_v8 }
 0x45c   : > { %946 = vmatmul.mubr.msk.bf16.vlgmr.msra.gmra.mrb[8].mxu0 %vm321_vm6, %v597_v54 }
 0x52f   : > { %v947_v10 = vpop.f32.mrb[8].mxu0 }
 0x530   : > { %v640_v11 = vpop.f32.mrb[9].mxu0 }
 0x531   : > { %v948_v12 = vpop.f32.mrb[10].mxu0 }
 0x532   : > { %v656_v13 = vpack.c.bf16 %v948_v12, %v947_v10  ;;  %v643_v14 = vpop.f32.mrb[11].mxu0 }
 0x533   : > { %v655_v15 = vpack.c.bf16 %v643_v14, %v640_v11 }
 0x535   : > { %949 = vmatprep.subr.bf16.mxu1 %v655_v15 }
 0x536   : > { %950 = vmatpush3.bf16.msra.mxu1 %v655_v15 }
 0x537   : > { %951 = vmatprep.subr.bf16.mxu1 %v656_v13 }
 0x53a   : > { %952 = vmatpush3.bf16.msra.mxu1 %v656_v13 }
 0x53d   : > { %954 = vmatmul.mubr.msk.bf16.vlgmr.msra.gmra.mrb[12].mxu1 %vm321_vm6, %v599_v8 }
 0x610   : > { %v955_v19 = vpop.f32.mrb[12].mxu1 }
 0x611   : > { %v714_v21 = vmul.f32 0.5, %v955_v19  ;;  %v697_v23 = vpop.f32.mrb[13].mxu1 }
 0x612   : > { %v712_v26 = vmul.f32 0.5, %v697_v23  ;;  %v956_v27 = vpop.f32.mrb[14].mxu1 }
 0x613   : > { %v718_v28 = vsub.f32 %v594_v20, %v714_v21  ;;  %v715_v30 = vmul.f32 0.5, %v956_v27  ;;  %v700_v48 = vpop.f32.mrb[15].mxu1 }
 0x614   : > { %v716_v32 = vsub.f32 %v592_v25, %v712_v26  ;;  %v713_v34 = vmul.f32 0.5, %v700_v48 }
 0x615   : > { %v730_v35 = vmul.f32 %v727_v31, %v718_v28  ;;  %v719_v36 = vsub.f32 %v595_v29, %v715_v30 }
 0x616   : > { %v728_v37 = vmul.f32 %v727_v31, %v716_v32  ;;  %v717_v38 = vsub.f32 %v593_v33, %v713_v34 }
 0x617   : > { %734 = vst.msk [vmem:[%s134_s25 + $0x10] sm:$0xff] %vm321_vm6, %v730_v35  ;;  %v731_v39 = vmul.f32 %v727_v31, %v719_v36 }
 0x618   : > { %732 = vst.msk [vmem:[%s134_s25] sm:$0xff] %vm321_vm6, %v728_v37  ;;  %v729_v40 = vmul.f32 %v727_v31, %v717_v38 }
 0x619   : > { %735 = vst.msk [vmem:[%s134_s25 + $0x18] sm:$0xff] %vm321_vm6, %v731_v39 }
 0x61a   : > { %733 = vst.msk [vmem:[%s134_s25 + $0x8] sm:$0xff] %vm321_vm6, %v729_v40 }
 0x61b   : > { %1067 = shalt.err (!%p1064_p2)
}
 0x61c   : > { %s1068_s13 = scalar_lea.hbm %s1306_s2, 512  ;;  %s1072_s20 = scalar_lea.hbm %s1356_s1, 1024 }
 0x61d   : > { %p1069_p4 = scmp.ne.s32.totalorder %s1306_s2, %s1068_s13  ;;  %p1073_p9 = scmp.lt.u32.totalorder %s1306_s2, %s1356_s1 }
 0x61e   : > { %p1074_p1 = scmp.lt.u32.totalorder %s1072_s20, %s1068_s13  ;;  %p1076_p6 = scmp.lt.u32.totalorder %s1068_s13, %s1306_s2 }
 0x61f   : > { %p1070_p5 = pnand %p1069_p4, %p1365_p11 }
 0x620   : > { %p1075_p3 = por %p1074_p1, %p1073_p9 }
 0x621   : > { %p1071_p7 = pneg %p1070_p5 }
 0x622   : > { %p1077_p12 = por %p1076_p6, %p1075_p3 }
 0x624   : > { %p1078_p13 = pnand %p1077_p12, %p1071_p7 }
 0x626   : > { %1081 = shalt.err (!%p1078_p13)
}
 0x627   : > { %s1127_s24 = smov 128   ;;  %s1128_s26 = smov 8  }
 0x628   : > { %971 = dma.vmem_to_hbm [thread:$0]  (%p1365_p11), %s1308_s27, 512, %s1306_s2, %s737_s10, %s1127_s24, %s1127_s24, %s1128_s26  }
 0x629 PF: > { %s765_s30 = sand.u32 1, %s1108_s6   ;;  %p1366_p8 = scmp.ne.s32.totalorder %s1361_s19, 0 }
 0x62a   : > { %p1367_p10 = scmp.ge.s32.totalorder %s1120_s9, 2  ;;  %s766_s17 = scalar_lea.sflag [#allocation4], %s765_s30 }
 0x62c   : > { %p978_p0 = pnand %p1367_p10, %p1366_p8 }
 0x62e   : > { %1103 = dma.done.wait (!%p978_p0), %s766_s17, 512  }
 0x62f   : > { %1105 = vsyncadd (!%p978_p0), %s766_s17, 4294966784  ;;  %p14_p2 = scmp.ge.s32.totalorder %s1164_s12, 4   ;;  %s1368_s6 = smov %s1112_s7 }
 0x630   : > { %s1369_s7 = smov %s1116_s8  ;;  %s1370_s8 = smov %s1176_s15 }
 0x631   : > { %s1371_s9 = smov %s1164_s12  ;;  %16 = sbr.rel (!%p14_p2) target bundleno = 5 (0x5), region = 69 }
 0x638   :  { %771 = vsyncpa [#allocation3], 1 }
 0x639   :  { %773 = vsyncpa [#allocation3 + $0x1], 1 }
 0x63a   :  { %774 = vsyncpa [#allocation4], 1 }
 0x63b   :  { %776 = vsyncpa [#allocation4 + $0x1], 1 }

</bundles_post_ra>
